<compile_context>
chip_gen: v7x
topology: tpu7x:2x2x1
jax: 0.10.0
libtpu: 0.0.40
codegen_flags: <defaults>
</compile_context>

<pallas_src>
import math

import jax
import jax.numpy as jnp
from jax.experimental import pallas as pl
from jax.experimental.pallas import tpu as pltpu

_NEG_SLOPE = 0.01
_H1, _H2, _H3, _H4 = 64, 32, 32, 1


def _leaky_relu(v):
    return jnp.where(v > 0, v, _NEG_SLOPE * v)


def nextk_nn_kernel(x_ref,
                    w1_ref, b1_ref,
                    w2_ref, b2_ref,
                    w3_ref, b3_ref,
                    w4_ref, b4_ref,
                    o_ref):
    """Fused 4-layer MLP on one batch tile; batch is on the lane axis."""
    x = x_ref[...]                      # [d_in, tile_b]
    d_in, tile_b = x.shape
    w1 = w1_ref[...]                    # [64, d_in]

    if d_in <= 8:
        # Layer 1 on the VPU: contraction depth d_in is tiny, so a handful of
        # broadcast FMAs over the lane-dense tile beat a heavily K-padded MXU
        # matmul and free the MXU/vex slot for the bigger layers.
        acc = jnp.broadcast_to(b1_ref[...], (w1.shape[0], tile_b))
        for k in range(d_in):
            acc = acc + w1[:, k:k + 1] * x[k:k + 1, :]
    else:
        acc = jnp.dot(w1, x, preferred_element_type=jnp.float32) + b1_ref[...]
    h = _leaky_relu(acc)                                               # [64, tile_b]

    h = _leaky_relu(
        jnp.dot(w2_ref[...], h, preferred_element_type=jnp.float32) + b2_ref[...])
    h = _leaky_relu(
        jnp.dot(w3_ref[...], h, preferred_element_type=jnp.float32) + b3_ref[...])
    y = jnp.dot(w4_ref[...], h, preferred_element_type=jnp.float32) + b4_ref[...]
    # Final sigmoid (exp goes to the EUP). Output tile is lane-dense [1, tile_b].
    o_ref[...] = (1.0 / (1.0 + jnp.exp(-y))).astype(o_ref.dtype)


def nextk_nn_forward(x, params, *, tile_b=512):
    """NextkNN forward pass via a fused Pallas kernel.

    x: [B, d_in] float32
    params: PyTorch-layout weights w1..w4 ([out, in]) and biases b1..b4 ([out]).
    tile_b: batch tile, multiple of 128 (lane width). The batch is zero-padded
            to a multiple of tile_b; padding is sliced off before returning.
    """
    assert tile_b % 128 == 0, "tile_b must be a multiple of 128 (lane width)"
    B, d_in = x.shape
    n_tiles = (B + tile_b - 1) // tile_b
    b_pad = n_tiles * tile_b

    # Batch on the lane axis; padded columns are independent and dropped later.
    x_t = jnp.pad(x.T.astype(jnp.float32), ((0, 0), (0, b_pad - B)))

    w1, w2, w3, w4 = params["w1"], params["w2"], params["w3"], params["w4"]
    b1 = params["b1"].reshape(-1, 1)
    b2 = params["b2"].reshape(-1, 1)
    b3 = params["b3"].reshape(-1, 1)
    b4 = params["b4"].reshape(-1, 1)

    def rep(shape):  # small constant operand: whole array, same block every step
        return pl.BlockSpec(shape, lambda i: (0, 0))

    flops = 2 * b_pad * (d_in * _H1 + _H1 * _H2 + _H2 * _H3 + _H3 * _H4)
    bytes_accessed = 4 * (
        b_pad * d_in + b_pad
        + w1.size + w2.size + w3.size + w4.size
        + b1.size + b2.size + b3.size + b4.size)

    out = pl.pallas_call(
        nextk_nn_kernel,
        out_shape=jax.ShapeDtypeStruct((1, b_pad), jnp.float32),
        grid_spec=pltpu.PrefetchScalarGridSpec(
            num_scalar_prefetch=0,
            grid=(n_tiles,),
            in_specs=[
                pl.BlockSpec((d_in, tile_b), lambda i: (0, i)),  # x^T batch tile
                rep(w1.shape), rep(b1.shape),
                rep(w2.shape), rep(b2.shape),
                rep(w3.shape), rep(b3.shape),
                rep(w4.shape), rep(b4.shape),
            ],
            out_specs=pl.BlockSpec((1, tile_b), lambda i: (0, i)),
        ),
        compiler_params=pltpu.CompilerParams(
            dimension_semantics=("parallel",)),
        cost_estimate=pl.CostEstimate(
            flops=flops,
            transcendentals=b_pad,          # one exp per output (sigmoid)
            bytes_accessed=bytes_accessed),
    )(x_t, w1, b1, w2, b2, w3, b3, w4, b4)

    return out[0, :B][:, None]              # -> [B, 1], padding dropped


def init_nextk_nn_params(key, d_in):
    """Deterministic init mimicking nn.Linear's default (Kaiming-uniform-ish)."""
    dims = [(d_in, _H1), (_H1, _H2), (_H2, _H3), (_H3, _H4)]
    params = {}
    for idx, (fan_in, fan_out) in enumerate(dims, start=1):
        key, kw, kb = jax.random.split(key, 3)
        bound = 1.0 / math.sqrt(fan_in)
        # PyTorch layout: weight [out, in], bias [out]
        params[f"w{idx}"] = jax.random.uniform(
            kw, (fan_out, fan_in), jnp.float32, -bound, bound)
        params[f"b{idx}"] = jax.random.uniform(
            kb, (fan_out,), jnp.float32, -bound, bound)
    return params


def nextk_nn_reference(x, p):
    h = _leaky_relu(x @ p["w1"].T + p["b1"])
    h = _leaky_relu(h @ p["w2"].T + p["b2"])
    h = _leaky_relu(h @ p["w3"].T + p["b3"])
    y = h @ p["w4"].T + p["b4"]
    return 1.0 / (1.0 + jnp.exp(-y))


if __name__ == "__main__":
    key = jax.random.PRNGKey(0)
    k_params, k_x = jax.random.split(key)

    d_in = 4        # e.g. state-vector dimension for the VFI next-k network
    batch = 200     # not a multiple of tile_b -> exercises the padding path
    params = init_nextk_nn_params(k_params, d_in)
    x = jax.random.normal(k_x, (batch, d_in), dtype=jnp.float32)

    # Small demo tile; production default is tile_b=512 (or larger). tile_b=128
    # keeps the grid length at 2 so both v7x TensorCores get a block.
    out = nextk_nn_forward(x, params, tile_b=128)
    out = jax.block_until_ready(out)

    ref = nextk_nn_reference(x, params)
    assert out.shape == (batch, 1)
    assert jnp.allclose(out, ref, atol=1e-5, rtol=1e-5), "mismatch vs reference"

    print("KERNEL_OK")
</pallas_src>

<mosaic_0001>
module attributes {stable_mosaic.version = 11 : i64} {
  func.func @nextk_nn_kernel(%arg0: i32, %arg1: memref<4x128xf32, #tpu.memory_space<vmem>>, %arg2: memref<64x4xf32, #tpu.memory_space<vmem>>, %arg3: memref<64x1xf32, #tpu.memory_space<vmem>>, %arg4: memref<32x64xf32, #tpu.memory_space<vmem>>, %arg5: memref<32x1xf32, #tpu.memory_space<vmem>>, %arg6: memref<32x32xf32, #tpu.memory_space<vmem>>, %arg7: memref<32x1xf32, #tpu.memory_space<vmem>>, %arg8: memref<1x32xf32, #tpu.memory_space<vmem>>, %arg9: memref<1x1xf32, #tpu.memory_space<vmem>>, %arg10: memref<1x128xf32, #tpu.memory_space<vmem>>) attributes {dimension_semantics = [#tpu.dimension_semantics<parallel>], iteration_bounds = array<i64: 2>, scalar_prefetch = 0 : i64, scratch_operands = 0 : i64, tpu.core_type = #tpu.core_type<tc>, window_params = [{transform_indices = @transform_0, window_bounds = array<i64: 4, 128>}, {pipeline_mode = #tpu.pipeline_mode<synchronous>, transform_indices = @transform_1, window_bounds = array<i64: 64, 4>}, {pipeline_mode = #tpu.pipeline_mode<synchronous>, transform_indices = @transform_2, window_bounds = array<i64: 64, 1>}, {pipeline_mode = #tpu.pipeline_mode<synchronous>, transform_indices = @transform_3, window_bounds = array<i64: 32, 64>}, {pipeline_mode = #tpu.pipeline_mode<synchronous>, transform_indices = @transform_4, window_bounds = array<i64: 32, 1>}, {pipeline_mode = #tpu.pipeline_mode<synchronous>, transform_indices = @transform_5, window_bounds = array<i64: 32, 32>}, {pipeline_mode = #tpu.pipeline_mode<synchronous>, transform_indices = @transform_6, window_bounds = array<i64: 32, 1>}, {pipeline_mode = #tpu.pipeline_mode<synchronous>, transform_indices = @transform_7, window_bounds = array<i64: 1, 32>}, {pipeline_mode = #tpu.pipeline_mode<synchronous>, transform_indices = @transform_8, window_bounds = array<i64: 1, 1>}, {transform_indices = @transform_9, window_bounds = array<i64: 1, 128>}]} {
    %c0 = arith.constant 0 : index
    %c0_0 = arith.constant 0 : index
    %0 = vector.load %arg1[%c0, %c0_0] : memref<4x128xf32, #tpu.memory_space<vmem>>, vector<4x128xf32>
    %c0_1 = arith.constant 0 : index
    %c0_2 = arith.constant 0 : index
    %1 = vector.load %arg2[%c0_1, %c0_2] : memref<64x4xf32, #tpu.memory_space<vmem>>, vector<64x4xf32>
    %c0_3 = arith.constant 0 : index
    %c0_4 = arith.constant 0 : index
    %2 = vector.load %arg3[%c0_3, %c0_4] : memref<64x1xf32, #tpu.memory_space<vmem>>, vector<64x1xf32>
    %3 = vector.shape_cast %2 : vector<64x1xf32> to vector<64x1xf32>
    %4 = vector.broadcast %3 : vector<64x1xf32> to vector<64x128xf32>
    %5 = vector.extract_strided_slice %1 {offsets = [0, 0], sizes = [64, 1], strides = [1, 1]} : vector<64x4xf32> to vector<64x1xf32>
    %6 = vector.extract_strided_slice %0 {offsets = [0, 0], sizes = [1, 128], strides = [1, 1]} : vector<4x128xf32> to vector<1x128xf32>
    %7 = vector.broadcast %5 : vector<64x1xf32> to vector<64x128xf32>
    %8 = vector.broadcast %6 : vector<1x128xf32> to vector<64x128xf32>
    %9 = arith.mulf %7, %8 : vector<64x128xf32>
    %10 = arith.addf %4, %9 : vector<64x128xf32>
    %11 = vector.extract_strided_slice %1 {offsets = [0, 1], sizes = [64, 1], strides = [1, 1]} : vector<64x4xf32> to vector<64x1xf32>
    %12 = vector.extract_strided_slice %0 {offsets = [1, 0], sizes = [1, 128], strides = [1, 1]} : vector<4x128xf32> to vector<1x128xf32>
    %13 = vector.broadcast %11 : vector<64x1xf32> to vector<64x128xf32>
    %14 = vector.broadcast %12 : vector<1x128xf32> to vector<64x128xf32>
    %15 = arith.mulf %13, %14 : vector<64x128xf32>
    %16 = arith.addf %10, %15 : vector<64x128xf32>
    %17 = vector.extract_strided_slice %1 {offsets = [0, 2], sizes = [64, 1], strides = [1, 1]} : vector<64x4xf32> to vector<64x1xf32>
    %18 = vector.extract_strided_slice %0 {offsets = [2, 0], sizes = [1, 128], strides = [1, 1]} : vector<4x128xf32> to vector<1x128xf32>
    %19 = vector.broadcast %17 : vector<64x1xf32> to vector<64x128xf32>
    %20 = vector.broadcast %18 : vector<1x128xf32> to vector<64x128xf32>
    %21 = arith.mulf %19, %20 : vector<64x128xf32>
    %22 = arith.addf %16, %21 : vector<64x128xf32>
    %23 = vector.extract_strided_slice %1 {offsets = [0, 3], sizes = [64, 1], strides = [1, 1]} : vector<64x4xf32> to vector<64x1xf32>
    %24 = vector.extract_strided_slice %0 {offsets = [3, 0], sizes = [1, 128], strides = [1, 1]} : vector<4x128xf32> to vector<1x128xf32>
    %25 = vector.broadcast %23 : vector<64x1xf32> to vector<64x128xf32>
    %26 = vector.broadcast %24 : vector<1x128xf32> to vector<64x128xf32>
    %27 = arith.mulf %25, %26 : vector<64x128xf32>
    %28 = arith.addf %22, %27 : vector<64x128xf32>
    %cst = arith.constant 0.000000e+00 : f32
    %29 = vector.broadcast %cst : f32 to vector<64x128xf32>
    %30 = arith.cmpf ogt, %28, %29 : vector<64x128xf32>
    %cst_5 = arith.constant 0.00999999977 : f32
    %31 = vector.broadcast %cst_5 : f32 to vector<64x128xf32>
    %32 = arith.mulf %31, %28 : vector<64x128xf32>
    %33 = arith.select %30, %28, %32 : vector<64x128xi1>, vector<64x128xf32>
    %c0_6 = arith.constant 0 : index
    %c0_7 = arith.constant 0 : index
    %34 = vector.load %arg4[%c0_6, %c0_7] : memref<32x64xf32, #tpu.memory_space<vmem>>, vector<32x64xf32>
    %cst_8 = arith.constant dense<0.000000e+00> : vector<32x128xf32>
    %35 = tpu.matmul %34, %33, %cst_8 {dimension_numbers = #tpu.dot_dimension_numbers<[1], [0], [0], [1], [0, 0, 1, 1], [], []>} : vector<32x64xf32>, vector<64x128xf32>, vector<32x128xf32> -> vector<32x128xf32>
    %c0_9 = arith.constant 0 : index
    %c0_10 = arith.constant 0 : index
    %36 = vector.load %arg5[%c0_9, %c0_10] : memref<32x1xf32, #tpu.memory_space<vmem>>, vector<32x1xf32>
    %37 = vector.broadcast %36 : vector<32x1xf32> to vector<32x128xf32>
    %38 = arith.addf %35, %37 : vector<32x128xf32>
    %cst_11 = arith.constant 0.000000e+00 : f32
    %39 = vector.broadcast %cst_11 : f32 to vector<32x128xf32>
    %40 = arith.cmpf ogt, %38, %39 : vector<32x128xf32>
    %cst_12 = arith.constant 0.00999999977 : f32
    %41 = vector.broadcast %cst_12 : f32 to vector<32x128xf32>
    %42 = arith.mulf %41, %38 : vector<32x128xf32>
    %43 = arith.select %40, %38, %42 : vector<32x128xi1>, vector<32x128xf32>
    %c0_13 = arith.constant 0 : index
    %c0_14 = arith.constant 0 : index
    %44 = vector.load %arg6[%c0_13, %c0_14] : memref<32x32xf32, #tpu.memory_space<vmem>>, vector<32x32xf32>
    %cst_15 = arith.constant dense<0.000000e+00> : vector<32x128xf32>
    %45 = tpu.matmul %44, %43, %cst_15 {dimension_numbers = #tpu.dot_dimension_numbers<[1], [0], [0], [1], [0, 0, 1, 1], [], []>} : vector<32x32xf32>, vector<32x128xf32>, vector<32x128xf32> -> vector<32x128xf32>
    %c0_16 = arith.constant 0 : index
    %c0_17 = arith.constant 0 : index
    %46 = vector.load %arg7[%c0_16, %c0_17] : memref<32x1xf32, #tpu.memory_space<vmem>>, vector<32x1xf32>
    %47 = vector.broadcast %46 : vector<32x1xf32> to vector<32x128xf32>
    %48 = arith.addf %45, %47 : vector<32x128xf32>
    %cst_18 = arith.constant 0.000000e+00 : f32
    %49 = vector.broadcast %cst_18 : f32 to vector<32x128xf32>
    %50 = arith.cmpf ogt, %48, %49 : vector<32x128xf32>
    %cst_19 = arith.constant 0.00999999977 : f32
    %51 = vector.broadcast %cst_19 : f32 to vector<32x128xf32>
    %52 = arith.mulf %51, %48 : vector<32x128xf32>
    %53 = arith.select %50, %48, %52 : vector<32x128xi1>, vector<32x128xf32>
    %c0_20 = arith.constant 0 : index
    %c0_21 = arith.constant 0 : index
    %54 = vector.load %arg8[%c0_20, %c0_21] : memref<1x32xf32, #tpu.memory_space<vmem>>, vector<1x32xf32>
    %cst_22 = arith.constant dense<0.000000e+00> : vector<1x128xf32>
    %55 = tpu.matmul %54, %53, %cst_22 {dimension_numbers = #tpu.dot_dimension_numbers<[1], [0], [0], [1], [0, 0, 1, 1], [], []>} : vector<1x32xf32>, vector<32x128xf32>, vector<1x128xf32> -> vector<1x128xf32>
    %c0_23 = arith.constant 0 : index
    %c0_24 = arith.constant 0 : index
    %56 = vector.load %arg9[%c0_23, %c0_24] : memref<1x1xf32, #tpu.memory_space<vmem>>, vector<1x1xf32>
    %57 = vector.broadcast %56 : vector<1x1xf32> to vector<1x128xf32>
    %58 = arith.addf %55, %57 : vector<1x128xf32>
    %cst_25 = arith.constant 0.000000e+00 : f32
    %59 = vector.broadcast %cst_25 : f32 to vector<1x128xf32>
    %60 = arith.subf %59, %58 : vector<1x128xf32>
    %61 = math.exp %60 : vector<1x128xf32>
    %cst_26 = arith.constant 1.000000e+00 : f32
    %62 = vector.broadcast %cst_26 : f32 to vector<1x128xf32>
    %63 = arith.addf %62, %61 : vector<1x128xf32>
    %cst_27 = arith.constant 1.000000e+00 : f32
    %64 = vector.broadcast %cst_27 : f32 to vector<1x128xf32>
    %65 = arith.divf %64, %63 : vector<1x128xf32>
    %c0_28 = arith.constant 0 : index
    %c0_29 = arith.constant 0 : index
    %66 = vector.load %arg10[%c0_28, %c0_29] : memref<1x128xf32, #tpu.memory_space<vmem>>, vector<1x128xf32>
    tpu.vector_store %arg10[%c0_28, %c0_29], %65 {strides = array<i32>} : memref<1x128xf32, #tpu.memory_space<vmem>>, vector<1x128xf32>,
    return
  }
  func.func @transform_0(%arg0: i32) -> (i32, i32) {
    %c0_i32 = arith.constant 0 : i32
    %c0_i32_0 = arith.constant 0 : i32
    return %c0_i32, %arg0 : i32, i32
  }
  func.func @transform_1(%arg0: i32) -> (i32, i32) {
    %c0_i32 = arith.constant 0 : i32
    %c0_i32_0 = arith.constant 0 : i32
    %c0_i32_1 = arith.constant 0 : i32
    return %c0_i32, %c0_i32_0 : i32, i32
  }
  func.func @transform_2(%arg0: i32) -> (i32, i32) {
    %c0_i32 = arith.constant 0 : i32
    %c0_i32_0 = arith.constant 0 : i32
    %c0_i32_1 = arith.constant 0 : i32
    return %c0_i32, %c0_i32_0 : i32, i32
  }
  func.func @transform_3(%arg0: i32) -> (i32, i32) {
    %c0_i32 = arith.constant 0 : i32
    %c0_i32_0 = arith.constant 0 : i32
    %c0_i32_1 = arith.constant 0 : i32
    return %c0_i32, %c0_i32_0 : i32, i32
  }
  func.func @transform_4(%arg0: i32) -> (i32, i32) {
    %c0_i32 = arith.constant 0 : i32
    %c0_i32_0 = arith.constant 0 : i32
    %c0_i32_1 = arith.constant 0 : i32
    return %c0_i32, %c0_i32_0 : i32, i32
  }
  func.func @transform_5(%arg0: i32) -> (i32, i32) {
    %c0_i32 = arith.constant 0 : i32
    %c0_i32_0 = arith.constant 0 : i32
    %c0_i32_1 = arith.constant 0 : i32
    return %c0_i32, %c0_i32_0 : i32, i32
  }
  func.func @transform_6(%arg0: i32) -> (i32, i32) {
    %c0_i32 = arith.constant 0 : i32
    %c0_i32_0 = arith.constant 0 : i32
    %c0_i32_1 = arith.constant 0 : i32
    return %c0_i32, %c0_i32_0 : i32, i32
  }
  func.func @transform_7(%arg0: i32) -> (i32, i32) {
    %c0_i32 = arith.constant 0 : i32
    %c0_i32_0 = arith.constant 0 : i32
    %c0_i32_1 = arith.constant 0 : i32
    return %c0_i32, %c0_i32_0 : i32, i32
  }
  func.func @transform_8(%arg0: i32) -> (i32, i32) {
    %c0_i32 = arith.constant 0 : i32
    %c0_i32_0 = arith.constant 0 : i32
    %c0_i32_1 = arith.constant 0 : i32
    return %c0_i32, %c0_i32_0 : i32, i32
  }
  func.func @transform_9(%arg0: i32) -> (i32, i32) {
    %c0_i32 = arith.constant 0 : i32
    %c0_i32_0 = arith.constant 0 : i32
    return %c0_i32, %arg0 : i32, i32
  }
}

</mosaic_0001>

<bundles_post_ra>
// kernel: tpu_custom_call.1
= control target key start
LH: loop header
LB: loop body
LE: loop exit
PB: predicated region body
PF: predicated region fallthrough
CT: control target
= control target key end

     0   :  { %s1671_s0 = inlined_call_operand.vmem [shape: f32[4,256], index: 0, kind: input, shape index: {}]   ;;  %s1672_s1 = inlined_call_operand.vmem [shape: f32[64,4], index: 1, kind: input, shape index: {}]   ;;  %s1673_s2 = inlined_call_operand.vmem [shape: f32[64,1], index: 2, kind: input, shape index: {}]   ;;  %s1674_s3 = inlined_call_operand.vmem [shape: f32[32,64], index: 3, kind: input, shape index: {}]   ;;  %s1675_s4 = inlined_call_operand.vmem [shape: f32[32,1], index: 4, kind: input, shape index: {}]   ;;  %s1676_s5 = inlined_call_operand.vmem [shape: f32[32,32], index: 5, kind: input, shape index: {}]   ;;  %s1677_s6 = inlined_call_operand.vmem [shape: f32[32,1], index: 6, kind: input, shape index: {}]   ;;  %s1678_s7 = inlined_call_operand.vmem [shape: f32[1,32], index: 7, kind: input, shape index: {}]   ;;  %s1679_s8 = inlined_call_operand.<no memory space> [shape: f32[1,1], index: 8, kind: input, shape index: {}]   ;;  %s1680_s9 = inlined_call_operand.hbm [shape: f32[1,256], index: 9, kind: output, shape index: {}]  }
   0x1   :  { %v14_v0 = vstv %s1679_s8 }
   0x2   :  { %15 = vst [vmem:[#allocation2] sm:$0x1] %v14_v0 }
   0x3   :  { %16 = vsyncpa [#allocation4], 0 }
   0x4   :  { %18 = vsyncpa [#allocation4 + $0x1], 0  ;;  %s1380_s11 = smov 0   ;;  %s1382_s12 = smov 0  }
   0x5   :  { %s1384_s13 = smov 0   ;;  %s1386_s14 = smov 0  }
   0x6 LB: > { %s1401_s8 = sadd.s32 4294967295, %s1317_s14   ;;  %s1061_s15 = sadd.s32 4294967294, %s1317_s14   ;;  %s1317_s14 = sphi %s1386_s14, %s1686_s14   ;;  %s1313_s13 = sphi %s1384_s13, %s1685_s13   ;;  %s1309_s12 = sphi %s1382_s12, %s1684_s12   ;;  %s1305_s11 = sphi %s1380_s11, %s1683_s11  }
   0x7   : > { %s1405_s16 = sadd.s32 1, %s1317_s14   ;;  %s225_s17 = sadd.s32 1, %s1313_s13 }
   0x8   : > { %s222_s18 = ssub.s32 %s1317_s14, %s1405_s16  ;;  %p235_p0 = scmp.ne.s32.totalorder %s1313_s13, %s1309_s12 }
   0x9   : > { %p223_p1 = scmp.eq.s32.totalorder %s222_s18, 0  ;;  %p236_p2 = scmp.eq.s32.totalorder %s1401_s8, 1 }
   0xa   : > { %p241_p3 = scmp.ne.s32.totalorder %s1309_s12, %s1305_s11  ;;  %p242_p4 = scmp.eq.s32.totalorder %s1061_s15, 1 }
   0xb   : > { %s1416_s19 = scalar_select %p223_p1, %s1313_s13, %s225_s17  }
   0xc   : > { %p1418_p5 = por %p236_p2, %p235_p0  ;;  %p1422_p6 = por %p242_p4, %p241_p3 }
   0xd   : > { %p1064_p7 = scmp.ge.s32.totalorder %s1317_s14, 1  ;;  %p291_p8 = scmp.lt.s32.totalorder %s1317_s14, 3 }
   0xf   : > { %p292_p9 = pnand %p1064_p7, %p291_p8 }
  0x10   : > { %v338_v1 = vld [vmem:[%s1673_s2] sm:$0xff] (!%p292_p9)  ;;  %v332_v2 = vld [vmem:[%s1672_s1 + $0x10] sm:$0xff] (!%p292_p9)  ;;  %v1319_v3 = vmov (!%p292_p9), 2   ;;  %v1320_v4 = vmov (!%p292_p9), 0   ;;  %v339_v5 = vld [vmem:[%s1673_s2 + $0x8] sm:$0xff] (!%p292_p9)  ;;  %v1321_v8 = vmov (!%p292_p9), 1   ;;  %v426_v38 = vlaneseq (!%p292_p9) }
  0x11   : > { %295 = sbr.rel (%p292_p9) target bundleno = 984 (0x3d8), region = 56  ;;  %1234 = vset.pattern.permute.xlu0 (!%p292_p9), %v1319_v3  ;;  %1226 = vset.pattern.permute.xlu1 (!%p292_p9), %v1320_v4  ;;  %v330_v6 = vld [vmem:[%s1672_s1] sm:$0xff] (!%p292_p9)  ;;  %v331_v7 = vld [vmem:[%s1672_s1 + $0x8] sm:$0xff] (!%p292_p9)  ;;  %v333_v9 = vld [vmem:[%s1672_s1 + $0x18] sm:$0xff] (!%p292_p9)  ;;  %v1322_v15 = vmov (!%p292_p9), 3   ;;  %vm654_vm0 = vcmask (!%p292_p9), 523264  }
  0x12   : > { %348 = vperm.xlu1 (!%p292_p9), %1226, %v338_v1   ;;  %507 = vperm.xlu0 (!%p292_p9), %1234, %v332_v2   ;;  %v340_v10 = vld [vmem:[%s1673_s2 + $0x10] sm:$0xff] (!%p292_p9)  ;;  %v343_v11 = vld [vmem:[%s1673_s2 + $0x28] sm:$0xff] (!%p292_p9)  ;;  %v337_v12 = vld [vmem:[%s1672_s1 + $0x38] sm:$0xff] (!%p292_p9)  ;;  %p325_p10 = scmp.lt.s32.totalorder (!%p292_p9), %s1401_s8, 1  ;;  %v1525_v42 = vshrl.u32 (!%p292_p9), %v426_v38, 7  ;;  %vm792_vm9 = vcmask (!%p292_p9), 261120  }
  0x13   : > { %v341_v13 = vld [vmem:[%s1673_s2 + $0x18] sm:$0xff] (!%p292_p9)  ;;  %v344_v14 = vld [vmem:[%s1673_s2 + $0x30] sm:$0xff] (!%p292_p9)  ;;  %v334_v17 = vld [vmem:[%s1672_s1 + $0x20] sm:$0xff] (!%p292_p9)  ;;  %vm1324_vm14 = vmmov (!%p292_p9), 0   ;;  %s323_s28 = sand.u32 (!%p292_p9), 1, %s1309_s12   ;;  %s1075_s29 = sshll.u32 (!%p292_p9), %s1401_s8, 4 }
  0x14   : > { %v336_v16 = vld [vmem:[%s1672_s1 + $0x30] sm:$0xff] (!%p292_p9)  ;;  %v335_v18 = vld [vmem:[%s1672_s1 + $0x28] sm:$0xff] (!%p292_p9)  ;;  %v342_v19 = vld [vmem:[%s1673_s2 + $0x20] sm:$0xff] (!%p292_p9)  ;;  %v428_v45 = vsub.s32 (!%p292_p9), 0, %v1525_v42  ;;  %v480_v50 = vsub.s32 (!%p292_p9), 1, %v1525_v42  ;;  %v532_v52 = vsub.s32 (!%p292_p9), 2, %v1525_v42 }
  0x15   : > { %v345_v20 = vld [vmem:[%s1673_s2 + $0x38] sm:$0xff] (!%p292_p9)  ;;  %v626_v21 = vld [vmem:[%s1674_s3] sm:$0xff] (!%p292_p9)  ;;  %v631_v25 = vld [vmem:[%s1675_s4 + $0x8] sm:$0xff] (!%p292_p9)  ;;  %v584_v57 = vsub.s32 (!%p292_p9), 3, %v1525_v42  ;;  %s324_s30 = scalar_lea.vmem (!%p292_p9), [#allocation3], %s323_s28  ;;  %s994_s22 = scalar_lea.sflag (!%p292_p9), [#allocation4], %s323_s28 }
  0x16   : > { %353 = vperm.xlu1 (!%p292_p9), %1226, %v339_v5   ;;  %1235 = vset.pattern.permute.xlu0 (!%p292_p9), %v1320_v4  ;;  %v630_v26 = vld [vmem:[%s1675_s4] sm:$0xff] (!%p292_p9)  ;;  %v632_v28 = vld [vmem:[%s1675_s4 + $0x10] sm:$0xff] (!%p292_p9)  ;;  %v633_v29 = vld [vmem:[%s1675_s4 + $0x18] sm:$0xff] (!%p292_p9)  ;;  %s1006_s10 = sshll.u32 (!%p292_p9), %s324_s30, 4  ;;  %s1631_s10 = int_to_ptr.vmem [resolvable:$true] %s1006_s10 }
  0x17   : > { %388 = vperm.xlu0 (!%p292_p9), %1235, %v330_v6   ;;  %1119 = vmatprep.mubr.msk.f32.mxu0 (!%p292_p9), %vm654_vm0, %v626_v21  ;;  %v768_v32 = vld [vmem:[%s1677_s6] sm:$0xff] (!%p292_p9)  ;;  %v769_v33 = vld [vmem:[%s1677_s6 + $0x8] sm:$0xff] (!%p292_p9)  ;;  %v770_v36 = vld [vmem:[%s1677_s6 + $0x10] sm:$0xff] (!%p292_p9)  ;;  %s1255_s23 = scalar_lea.vmem (!%p292_p9), %s1631_s10, 16 }
  0x18   : > { %v771_v37 = vld [vmem:[%s1677_s6 + $0x18] sm:$0xff]  ;;  %s326_s17 = scalar_select %p325_p10, %s1401_s8, 1  ;;  %v903_v40 = vld [vmem:[#allocation2] sm:$0x1] }
  0x19   : > { %p1256_p11 = scmp.ne.s32.totalorder %s1631_s10, %s1255_s23  ;;  %s1326_s8 = smov [#allocation3]  }
  0x1a   : > { %1227 = vset.pattern.permute.xlu1 %v1321_v8  ;;  %s1065_s18 = sshll.u32 %s326_s17, 2 }
  0x1b   : > { %451 = vperm.xlu1 %1227, %v331_v7   ;;  %393 = vperm.xlu0 %1235, %v331_v7   ;;  %s328_s24 = scalar_lea.vmem %s1671_s0, %s1065_s18  ;;  %s1629_s18 = scalar_lea.hbm %s1680_s9, %s1075_s29 }
  0x1c   : > { %v329_v46 = vld [vmem:[%s328_s24] sm:$0xf]  ;;  %p1257_p12 = pnand %p1256_p11, %p1418_p5  ;;  %s1259_s24 = sshll.u32 %s1326_s8, 4  ;;  %s1260_s24 = int_to_ptr.vmem [resolvable:$false] %s1259_s24 }
  0x1d   : > { %v1537_v48 = vrot.slane %v329_v46, %v428_v45  ;;  %v1544_v54 = vrot.slane %v329_v46, %v480_v50  ;;  %v1548_v59 = vrot.slane %v329_v46, %v532_v52  ;;  %v1551_v1 = vrot.slane %v329_v46, %v584_v57  ;;  %s1261_s25 = scalar_lea.vmem %s1260_s24, 32  ;;  %p1262_p0 = scmp.lt.s32.totalorder %s1631_s10, %s1260_s24 }
  0x1e   : > { %p1258_p13 = pneg %p1257_p12  ;;  %p1263_p1 = scmp.lt.s32.totalorder %s1261_s25, %s1255_s23 }
  0x1f   : > { %1228 = vset.pattern.permute.xlu1 %v1320_v4  ;;  %403 = vperm.xlu0 %1235, %v333_v9  }
  0x20   : > { %398 = vperm.xlu1 %1228, %v332_v2   ;;  %p1264_p2 = por %p1263_p1, %p1262_p0 }
  0x22   : > { %p1265_p3 = pnand %p1264_p2, %p1258_p13 }
  0x23   : > { %358 = vperm.xlu0 %1235, %v340_v10  }
  0x24   : > { %1229 = vset.pattern.permute.xlu1 %v1319_v3 }
  0x25   : > { %499 = vperm.xlu1 %1229, %v330_v6  }
  0x27   : > { %373 = vperm.xlu0 %1235, %v343_v11  }
  0x29   : > { %503 = vperm.xlu1 %1229, %v331_v7  }
  0x2b   : > { %423 = vperm.xlu0 %1235, %v337_v12  }
  0x2d   : > { %1230 = vset.pattern.permute.xlu1 %v1320_v4 }
  0x2e   : > { %363 = vperm.xlu1 %1230, %v341_v13  }
  0x2f   : > { %378 = vperm.xlu0 %1235, %v344_v14  }
  0x32   : > { %1231 = vset.pattern.permute.xlu1 %v1321_v8 }
  0x33   : > { %1242 = vset.pattern.permute.xlu0 %v1321_v8  ;;  %459 = vperm.xlu1 %1231, %v333_v9  }
  0x34   : > { %447 = vperm.xlu0 %1242, %v330_v6  }
  0x37   : > { %1232 = vset.pattern.permute.xlu1 %v1322_v15 }
  0x38   : > { %455 = vperm.xlu0 %1242, %v332_v2   ;;  %551 = vperm.xlu1 %1232, %v330_v6  }
  0x3c   : > { %471 = vperm.xlu0 %1242, %v336_v16   ;;  %1233 = vset.pattern.permute.xlu1 %v1320_v4 }
  0x3d   : > { %408 = vperm.xlu1 %1233, %v334_v17  }
  0x40   : > { %1244 = vset.pattern.permute.xlu0 %v1322_v15 }
  0x41   : > { %555 = vperm.xlu0 %1244, %v331_v7   ;;  %413 = vperm.xlu1 %1233, %v335_v18  }
  0x45   : > { %559 = vperm.xlu0 %1244, %v332_v2   ;;  %1236 = vset.pattern.permute.xlu1 %v1319_v3 }
  0x46   : > { %511 = vperm.xlu1 %1236, %v333_v9  }
  0x49   : > { %571 = vperm.xlu0 %1244, %v335_v18  }
  0x4a   : > { %1237 = vset.pattern.permute.xlu1 %v1320_v4 }
  0x4b   : > { %368 = vperm.xlu1 %1237, %v342_v19  }
  0x4d   : > { %575 = vperm.xlu0 %1244, %v336_v16  }
  0x4f   : > { %1238 = vset.pattern.permute.xlu1 %v1321_v8 }
  0x50   : > { %463 = vperm.xlu1 %1238, %v334_v17  }
  0x51   : > { %1249 = vset.pattern.permute.xlu0 %v1320_v4 }
  0x52   : > { %636 = vperm.xlu0 %1249, %v630_v26  }
  0x54   : > { %467 = vperm.xlu1 %1238, %v335_v18  }
  0x56   : > { %651 = vperm.xlu0 %1249, %v633_v29  }
  0x58   : > { %1239 = vset.pattern.permute.xlu1 %v1322_v15 }
  0x59   : > { %563 = vperm.xlu1 %1239, %v333_v9  }
  0x5a   : > { %779 = vperm.xlu0 %1249, %v769_v33  }
  0x5d   : > { %1240 = vset.pattern.permute.xlu1 %v1320_v4 }
  0x5e   : > { %418 = vperm.xlu1 %1240, %v336_v16   ;;  %789 = vperm.xlu0 %1249, %v771_v37  }
  0x62   : > { %1241 = vset.pattern.permute.xlu1 %v1319_v3 }
  0x63   : > { %515 = vperm.xlu1 %1241, %v334_v17  }
  0x67   : > { %519 = vperm.xlu1 %1241, %v335_v18  }
  0x6b   : > { %1243 = vset.pattern.permute.xlu1 %v1320_v4 }
  0x6c   : > { %383 = vperm.xlu1 %1243, %v345_v20  }
  0x70   : > { %1245 = vset.pattern.permute.xlu1 %v1321_v8 }
  0x71   : > { %475 = vperm.xlu1 %1245, %v337_v12  }
  0x75   : > { %1246 = vset.pattern.permute.xlu1 %v1322_v15 }
  0x76   : > { %567 = vperm.xlu1 %1246, %v334_v17  }
  0x7a   : > { %1247 = vset.pattern.permute.xlu1 %v1319_v3 }
  0x7b   : > { %523 = vperm.xlu1 %1247, %v336_v16  }
  0x7f   : > { %527 = vperm.xlu1 %1247, %v337_v12  }
  0x83   : > { %1248 = vset.pattern.permute.xlu1 %v1322_v15 }
  0x84   : > { %579 = vperm.xlu1 %1248, %v337_v12  }
  0x88   : > { %1250 = vset.pattern.permute.xlu1 %v1320_v4 }
  0x89   : > { %641 = vperm.xlu1 %1250, %v631_v25  }
  0x8d   : > { %646 = vperm.xlu1 %1250, %v632_v28  }
  0x91   : > { %v349_v22 = vpop.permute.xlu1 %348  ;;  %v1495_v23 = vpop.permute.xlu0 %507  ;;  %774 = vperm.xlu1 %1250, %v768_v32  }
  0x95   : > { %v354_v24 = vpop.permute.xlu1 %353  ;;  %784 = vperm.xlu1 %1250, %v770_v36  }
  0x96   : > { %v389_v27 = vpop.permute.xlu0 %388 }
  0x97   : > { %v430_v53 = vmul.f32 %v1537_v48, %v389_v27 }
  0x99   : > { %906 = vperm.xlu1 %1250, %v903_v40   ;;  %v438_v60 = vadd.f32 %v430_v53, %v349_v22 }
  0x9a   : > { %v452_v30 = vpop.permute.xlu1 %451  ;;  %v394_v31 = vpop.permute.xlu0 %393 }
  0x9b   : > { %v431_v61 = vmul.f32 %v1537_v48, %v394_v31  ;;  %v483_v8 = vmul.f32 %v1544_v54, %v452_v30  ;;  %v536_v30 = vmul.f32 %v1548_v59, %v1495_v23 }
  0x9d   : > { %v439_v3 = vadd.f32 %v431_v61, %v354_v24 }
  0x9e   : > { %v1516_v34 = vpop.permute.xlu0 %403 }
  0x9f   : > { %v399_v35 = vpop.permute.xlu1 %398  ;;  %v491_v10 = vadd.f32 %v483_v8, %v439_v3  ;;  %v433_v31 = vmul.f32 %v1537_v48, %v1516_v34 }
  0xa0   : > { %v432_v25 = vmul.f32 %v1537_v48, %v399_v35 }
  0xa2   : > { %v359_v39 = vpop.permute.xlu0 %358 }
  0xa3   : > { %v440_v27 = vadd.f32 %v432_v25, %v359_v39 }
  0xa4   : > { %v500_v41 = vpop.permute.xlu1 %499 }
  0xa5   : > { %v534_v2 = vmul.f32 %v1548_v59, %v500_v41 }
  0xa6   : > { %v1527_v43 = vpop.permute.xlu0 %373 }
  0xa8   : > { %v504_v44 = vpop.permute.xlu1 %503 }
  0xa9   : > { %v535_v9 = vmul.f32 %v1548_v59, %v504_v44 }
  0xaa   : > { %v1533_v47 = vpop.permute.xlu0 %423 }
  0xab   : > { %v543_v14 = vadd.f32 %v535_v9, %v491_v10 }
  0xad   : > { %v364_v49 = vpop.permute.xlu1 %363 }
  0xae   : > { %v1540_v51 = vpop.permute.xlu0 %378  ;;  %v441_v38 = vadd.f32 %v433_v31, %v364_v49 }
  0xb2   : > { %v460_v55 = vpop.permute.xlu1 %459 }
  0xb3   : > { %v448_v56 = vpop.permute.xlu0 %447  ;;  %v485_v33 = vmul.f32 %v1544_v54, %v460_v55 }
  0xb4   : > { %v482_v58 = vmul.f32 %v1544_v54, %v448_v56 }
  0xb5   : > { %v493_v41 = vadd.f32 %v485_v33, %v441_v38 }
  0xb6   : > { %v490_v62 = vadd.f32 %v482_v58, %v438_v60 }
  0xb7   : > { %v456_v63 = vpop.permute.xlu0 %455  ;;  %v552_v0 = vpop.permute.xlu1 %551 }
  0xb8   : > { %v542_v4 = vadd.f32 %v534_v2, %v490_v62  ;;  %v586_v5 = vmul.f32 %v1551_v1, %v552_v0  ;;  %v484_v26 = vmul.f32 %v1544_v54, %v456_v63 }
  0xba   : > { %v594_v11 = vadd.f32 %v586_v5, %v542_v4  ;;  %v492_v32 = vadd.f32 %v484_v26, %v440_v27 }
  0xbb   : > { %v472_v6 = vpop.permute.xlu0 %471 }
  0xbc   : > { %v1555_v7 = vpop.permute.xlu1 %408  ;;  %v610_v17 = vmul.f32 0.01, %v594_v11  ;;  %vm602_vm1 = vcmp.gt.f32.partialorder %v594_v11, 0.0  ;;  %v544_v35 = vadd.f32 %v536_v30, %v492_v32  ;;  %v488_v55 = vmul.f32 %v1544_v54, %v472_v6 }
  0xbe   : > { %v618_v20 = vsel %vm602_vm1, %v594_v11, %v610_v17 }
  0xc0   : > { %v556_v12 = vpop.permute.xlu0 %555  ;;  %v414_v13 = vpop.permute.xlu1 %413 }
  0xc1   : > { %v587_v15 = vmul.f32 %v1551_v1, %v556_v12  ;;  %v435_v0 = vmul.f32 %v1537_v48, %v414_v13 }
  0xc3   : > { %v595_v16 = vadd.f32 %v587_v15, %v543_v14  ;;  %v443_v4 = vadd.f32 %v435_v0, %v1527_v43 }
  0xc4   : > { %v560_v29 = vpop.permute.xlu0 %559 }
  0xc5   : > { %v512_v18 = vpop.permute.xlu1 %511  ;;  %vm603_vm2 = vcmp.gt.f32.partialorder %v595_v16, 0.0  ;;  %v611_v19 = vmul.f32 0.01, %v595_v16  ;;  %v588_v36 = vmul.f32 %v1551_v1, %v560_v29 }
  0xc6   : > { %v537_v40 = vmul.f32 %v1548_v59, %v512_v18 }
  0xc7   : > { %v619_v21 = vsel %vm603_vm2, %v595_v16, %v611_v19  ;;  %v596_v39 = vadd.f32 %v588_v36, %v544_v35 }
  0xc8   : > { %v1150_v22 = vpack.c.bf16 %v619_v21, %v618_v20  ;;  %v545_v46 = vadd.f32 %v537_v40, %v493_v41  ;;  %v572_v6 = vpop.permute.xlu0 %571 }
  0xc9   : > { %v612_v23 = vmul.f32 0.01, %v596_v39  ;;  %vm604_vm3 = vcmp.gt.f32.partialorder %v596_v39, 0.0  ;;  %v591_v11 = vmul.f32 %v1551_v1, %v572_v6 }
  0xca   : > { %v369_v24 = vpop.permute.xlu1 %368  ;;  %1151 = vmatprep.subr.bf16.mxu0 %v1150_v22 }
  0xcb   : > { %1153 = vmatpush3.bf16.msra.mxu0 %v1150_v22  ;;  %v620_v49 = vsel %vm604_vm3, %v596_v39, %v612_v23  ;;  %v764_v23 = vld [vmem:[%s1676_s5] sm:$0xff] }
  0xcc   : > { %v576_v27 = vpop.permute.xlu0 %575  ;;  %1133 = vmatprep.mubr.msk.f32.mxu1 %vm792_vm9, %v764_v23 }
  0xcd   : > { %v592_v33 = vmul.f32 %v1551_v1, %v576_v27 }
  0xcf   : > { %v464_v28 = vpop.permute.xlu1 %463 }
  0xd0   : > { %v486_v9 = vmul.f32 %v1544_v54, %v464_v28  ;;  %v437_v28 = vmul.f32 %v1537_v48, %v1533_v47 }
  0xd3   : > { %v468_v37 = vpop.permute.xlu1 %467 }
  0xd4   : > { %v487_v2 = vmul.f32 %v1544_v54, %v468_v37 }
  0xd6   : > { %v495_v8 = vadd.f32 %v487_v2, %v443_v4 }
  0xd8   : > { %v564_v44 = vpop.permute.xlu1 %563 }
  0xd9   : > { %v589_v50 = vmul.f32 %v1551_v1, %v564_v44 }
  0xdb   : > { %v597_v52 = vadd.f32 %v589_v50, %v545_v46  ;;  %v628_v50 = vld [vmem:[%s1674_s3 + $0x10] sm:$0xff] }
  0xdd   : > { %vm605_vm4 = vcmp.gt.f32.partialorder %v597_v52, 0.0  ;;  %v613_v34 = vmul.f32 0.01, %v597_v52  ;;  %v419_v53 = vpop.permute.xlu1 %418 }
  0xde   : > { %v436_v56 = vmul.f32 %v1537_v48, %v419_v53 }
  0xdf   : > { %v621_v57 = vsel %vm605_vm4, %v597_v52, %v613_v34  ;;  %v637_v52 = vpop.permute.xlu0 %636 }
  0xe0   : > { %v444_v58 = vadd.f32 %v436_v56, %v1540_v51  ;;  %v1154_v60 = vpack.c.bf16 %v621_v57, %v620_v49  ;;  %v434_v51 = vmul.f32 %v1537_v48, %v1555_v7 }
  0xe2   : > { %v516_v61 = vpop.permute.xlu1 %515  ;;  %1155 = vmatprep.subr.bf16.mxu0 %v1154_v60  ;;  %v496_v62 = vadd.f32 %v488_v55, %v444_v58  ;;  %v442_v14 = vadd.f32 %v434_v51, %v369_v24 }
  0xe3   : > { %1157 = vmatpush3.bf16.msra.mxu0 %v1154_v60  ;;  %v538_v13 = vmul.f32 %v1548_v59, %v516_v61  ;;  %v652_v58 = vpop.permute.xlu0 %651 }
  0xe4   : > { %v494_v15 = vadd.f32 %v486_v9, %v442_v14  ;;  %v767_v14 = vld [vmem:[%s1676_s5 + $0x18] sm:$0xff] }
  0xe6   : > { %v520_v63 = vpop.permute.xlu1 %519  ;;  %v546_v43 = vadd.f32 %v538_v13, %v494_v15  ;;  %v1323_v13 = vmov 0.0|0.0   ;;  %v1325_v15 = vmov 0.0  }
  0xe7   : > { %v539_v5 = vmul.f32 %v1548_v59, %v520_v63 }
  0xe9   : > { %v547_v10 = vadd.f32 %v539_v5, %v495_v8 }
  0xeb   : > { %v384_v3 = vpop.permute.xlu1 %383  ;;  %v599_v16 = vadd.f32 %v591_v11, %v547_v10  ;;  %v765_v11 = vld [vmem:[%s1676_s5 + $0x8] sm:$0xff] }
  0xec   : > { %v445_v32 = vadd.f32 %v437_v28, %v384_v3 }
  0xed   : > { %v615_v19 = vmul.f32 0.01, %v599_v16  ;;  %vm607_vm5 = vcmp.gt.f32.partialorder %v599_v16, 0.0 }
  0xef   : > { %v623_v26 = vsel %vm607_vm5, %v599_v16, %v615_v19  ;;  %v780_v16 = vpop.permute.xlu0 %779 }
  0xf0   : > { %v476_v12 = vpop.permute.xlu1 %475 }
  0xf1   : > { %v489_v29 = vmul.f32 %v1544_v54, %v476_v12  ;;  %v766_v12 = vld [vmem:[%s1676_s5 + $0x10] sm:$0xff] }
  0xf3   : > { %v497_v37 = vadd.f32 %v489_v29, %v445_v32 }
  0xf5   : > { %v568_v17 = vpop.permute.xlu1 %567 }
  0xf6   : > { %v590_v18 = vmul.f32 %v1551_v1, %v568_v17 }
  0xf8   : > { %v598_v20 = vadd.f32 %v590_v18, %v546_v43 }
  0xfa   : > { %vm606_vm6 = vcmp.gt.f32.partialorder %v598_v20, 0.0  ;;  %v614_v7 = vmul.f32 0.01, %v598_v20  ;;  %v524_v21 = vpop.permute.xlu1 %523 }
  0xfb   : > { %v540_v22 = vmul.f32 %v1548_v59, %v524_v21  ;;  %v790_v21 = vpop.permute.xlu0 %789 }
  0xfc   : > { %v622_v25 = vsel %vm606_vm6, %v598_v20, %v614_v7 }
  0xfd   : > { %v1158_v24 = vpack.c.bf16 %v623_v26, %v622_v25  ;;  %v548_v30 = vadd.f32 %v540_v22, %v496_v62 }
  0xfe   : > { %v528_v31 = vpop.permute.xlu1 %527 }
  0xff   : > { %1159 = vmatprep.subr.bf16.mxu0 %v1158_v24  ;;  %v541_v36 = vmul.f32 %v1548_v59, %v528_v31  ;;  %v600_v38 = vadd.f32 %v592_v33, %v548_v30  ;;  %v627_v59 = vld [vmem:[%s1674_s3 + $0x8] sm:$0xff] }
 0x100   : > { %1161 = vmatpush3.bf16.msra.mxu0 %v1158_v24 }
 0x101   : > { %v549_v40 = vadd.f32 %v541_v36, %v497_v37  ;;  %v616_v39 = vmul.f32 0.01, %v600_v38  ;;  %vm608_vm7 = vcmp.gt.f32.partialorder %v600_v38, 0.0 }
 0x103   : > { %v580_v35 = vpop.permute.xlu1 %579  ;;  %v624_v48 = vsel %vm608_vm7, %v600_v38, %v616_v39 }
 0x104   : > { %v593_v41 = vmul.f32 %v1551_v1, %v580_v35  ;;  %v629_v1 = vld [vmem:[%s1674_s3 + $0x18] sm:$0xff]  ;;  %v902_v35 = vld [vmem:[%s1678_s7] sm:$0x1] }
 0x106   : > { %v601_v44 = vadd.f32 %v593_v41, %v549_v40 }
 0x108   : > { %vm609_vm8 = vcmp.gt.f32.partialorder %v601_v44, 0.0  ;;  %v617_v47 = vmul.f32 0.01, %v601_v44  ;;  %v642_v34 = vpop.permute.xlu1 %641 }
 0x10a   : > { %v625_v54 = vsel %vm609_vm8, %v601_v44, %v617_v47 }
 0x10b   : > { %v1162_v46 = vpack.c.bf16 %v625_v54, %v624_v48 }
 0x10c   : > { %v647_v62 = vpop.permute.xlu1 %646 }
 0x10d   : > { %1163 = vmatprep.subr.bf16.mxu0 %v1162_v46 }
 0x10e   : > { %1165 = vmatpush3.bf16.msra.mxu0 %v1162_v46 }
 0x110   : > { %v775_v17 = vpop.permute.xlu1 %774 }
 0x111   : > { %1120 = vmatmul.mubr.msk.f32.vlgmr.msra.gmra.mrb[0].mxu0 %vm654_vm0, %v627_v59 }
 0x112   : > { %1122 = vmatprep.mubr.msk.f32.mxu0 %vm654_vm0, %v628_v50 }
 0x114   : > { %v785_v26 = vpop.permute.xlu1 %784 }
 0x115   : > { %1123 = vmatmul.mubr.msk.f32.gmra.mrb[2].mxu0 %vm654_vm0, %v629_v1 }
 0x118   : > { %v907_v40 = vpop.permute.xlu1 %906 }
 0x119   : > { %v912_v41 = vrot.slane %v907_v40, %v428_v45 }
 0x1e4   : > { %v1121_v53 = vpop.f32.mrb[0].mxu0 }
 0x1e5   : > { %v739_v55 = vadd.f32 %v1121_v53, %v642_v34  ;;  %v733_v56 = vpop.f32.mrb[1].mxu0 }
 0x1e6   : > { %v734_v49 = vadd.f32 %v733_v56, %v637_v52 }
 0x1e7   : > { %v757_v57 = vmul.f32 0.01, %v739_v55  ;;  %vm753_vm10 = vcmp.gt.f32.partialorder %v739_v55, 0.0 }
 0x1e8   : > { %v756_v60 = vmul.f32 0.01, %v734_v49  ;;  %v1124_v61 = vpop.f32.mrb[2].mxu0  ;;  %vm752_vm11 = vcmp.gt.f32.partialorder %v734_v49, 0.0 }
 0x1e9   : > { %v749_v63 = vadd.f32 %v1124_v61, %v652_v58  ;;  %v743_v0 = vpop.f32.mrb[3].mxu0  ;;  %v761_v2 = vsel %vm753_vm10, %v739_v55, %v757_v57 }
 0x1ea   : > { %v744_v3 = vadd.f32 %v743_v0, %v647_v62  ;;  %v760_v4 = vsel %vm752_vm11, %v734_v49, %v756_v60 }
 0x1eb   : > { %vm755_vm12 = vcmp.gt.f32.partialorder %v749_v63, 0.0  ;;  %v759_v5 = vmul.f32 0.01, %v749_v63  ;;  %v1166_v6 = vpack.c.bf16 %v761_v2, %v760_v4 }
 0x1ec   : > { %vm754_vm13 = vcmp.gt.f32.partialorder %v744_v3, 0.0  ;;  %v758_v8 = vmul.f32 0.01, %v744_v3 }
 0x1ed   : > { %1167 = vmatprep.subr.bf16.mxu1 %v1166_v6  ;;  %v763_v51 = vsel %vm755_vm12, %v749_v63, %v759_v5 }
 0x1ee   : > { %1169 = vmatpush3.bf16.msra.mxu1 %v1166_v6  ;;  %v762_v9 = vsel %vm754_vm13, %v744_v3, %v758_v8 }
 0x1ef   : > { %v1170_v10 = vpack.c.bf16 %v763_v51, %v762_v9 }
 0x1f1   : > { %1171 = vmatprep.subr.bf16.mxu1 %v1170_v10 }
 0x1f2   : > { %1173 = vmatpush3.bf16.msra.mxu1 %v1170_v10 }
 0x1f3   : > { %1174 = vmatprep.subr.bf16.mxu1 %v1323_v13 }
 0x1f5   : > { %1134 = vmatmul.mubr.msk.f32.vlgmr.msra.gmra.mrb[0].mxu1 %vm792_vm9, %v765_v11 }
 0x1f6   : > { %1136 = vmatprep.mubr.msk.f32.mxu1 %vm792_vm9, %v766_v12 }
 0x1f9   : > { %1137 = vmatmul.mubr.msk.f32.gmra.mrb[2].mxu1 %vm792_vm9, %v767_v14 }
 0x1fa   : > { %1147 = vmatprep.mubr.msk.f32.mxu1 %vm1324_vm14, %v1325_v15 }
 0x2c8   : > { %v1135_v43 = vpop.f32.mrb[0].mxu1 }
 0x2c9   : > { %v877_v18 = vadd.f32 %v1135_v43, %v780_v16  ;;  %v871_v19 = vpop.f32.mrb[1].mxu1 }
 0x2ca   : > { %v872_v20 = vadd.f32 %v871_v19, %v775_v17 }
 0x2cb   : > { %vm891_vm15 = vcmp.gt.f32.partialorder %v877_v18, 0.0  ;;  %v895_v7 = vmul.f32 0.01, %v877_v18 }
 0x2cc   : > { %vm890_vm0 = vcmp.gt.f32.partialorder %v872_v20, 0.0  ;;  %v894_v22 = vmul.f32 0.01, %v872_v20  ;;  %v1138_v25 = vpop.f32.mrb[2].mxu1 }
 0x2cd   : > { %v899_v27 = vsel %vm891_vm15, %v877_v18, %v895_v7  ;;  %v887_v24 = vadd.f32 %v1138_v25, %v790_v21  ;;  %v881_v28 = vpop.f32.mrb[3].mxu1 }
 0x2ce   : > { %v898_v29 = vsel %vm890_vm0, %v872_v20, %v894_v22  ;;  %v882_v30 = vadd.f32 %v881_v28, %v785_v26 }
 0x2cf   : > { %v1175_v31 = vpack.c.bf16 %v899_v27, %v898_v29  ;;  %vm893_vm1 = vcmp.gt.f32.partialorder %v887_v24, 0.0  ;;  %v897_v32 = vmul.f32 0.01, %v887_v24 }
 0x2d0   : > { %vm892_vm2 = vcmp.gt.f32.partialorder %v882_v30, 0.0  ;;  %v896_v33 = vmul.f32 0.01, %v882_v30 }
 0x2d1   : > { %v901_v36 = vsel %vm893_vm1, %v887_v24, %v897_v32  ;;  %1176 = vmatpush3.bf16.msra.mxu1 %v1175_v31 }
 0x2d2   : > { %v900_v37 = vsel %vm892_vm2, %v882_v30, %v896_v33  ;;  %1177 = vmatprep.subr.bf16.mxu1 %v1323_v13 }
 0x2d3   : > { %v1178_v38 = vpack.c.bf16 %v901_v36, %v900_v37 }
 0x2d5   : > { %1179 = vmatpush3.bf16.msra.mxu1 %v1178_v38 }
 0x2d8   : > { %1148 = vmatmul.mubr.msk.f32.vlgmr.msra.gmra.mrb[4].mxu1 %vm792_vm9, %v902_v35 }
 0x3ab   : > { %v982_v39 = vpop.f32.mrb[4].mxu1 }
 0x3ac   : > { %v983_v44 = vadd.f32 %v982_v39, %v912_v41  ;;  %v1149_v47 = vpop.f32.mrb[5].mxu1 }
 0x3ae   : > { %v986_v48 = vsub.f32 0.0, %v983_v44 }
 0x3b0   : > { %v987_v54 = vmul.f32 1.442695, %v986_v48 }
 0x3b2   : > { %1251 = vpow2.f32 %v987_v54 }
 0x3bc   : > { %v1252_v46 = vpop.eup %1251 }
 0x3bd   : > { %v989_v59 = vadd.f32 1.0, %v1252_v46 }
 0x3bf   : > { %1253 = vrcp.f32 %v989_v59 }
 0x3c9   : > { %v1254_v42 = vpop.eup %1253 }
 0x3ca   : > { %992 = vst [vmem:[%s324_s30] sm:$0x1] %v1254_v42 }
 0x3cb   : > { %1268 = shalt.err (!%p1265_p3)
}
 0x3cc   : > { %s1269_s26 = scalar_lea.hbm %s1629_s18, 16  ;;  %s1273_s29 = scalar_lea.hbm %s1680_s9, 32 }
 0x3cd   : > { %p1270_p4 = scmp.ne.s32.totalorder %s1629_s18, %s1269_s26  ;;  %p1274_p9 = scmp.lt.u32.totalorder %s1629_s18, %s1680_s9 }
 0x3ce   : > { %p1275_p10 = scmp.lt.u32.totalorder %s1273_s29, %s1269_s26  ;;  %p1277_p12 = scmp.lt.u32.totalorder %s1269_s26, %s1629_s18 }
 0x3cf   : > { %p1271_p7 = pnand %p1270_p4, %p1418_p5 }
 0x3d0   : > { %p1276_p11 = por %p1275_p10, %p1274_p9 }
 0x3d1   : > { %p1272_p8 = pneg %p1271_p7 }
 0x3d2   : > { %p1278_p13 = por %p1277_p12, %p1276_p11 }
 0x3d4   : > { %p1279_p0 = pnand %p1278_p13, %p1272_p8 }
 0x3d6   : > { %1282 = shalt.err (!%p1279_p0)
}
 0x3d7   : > { %1180 = dma.vmem_to_hbm [thread:$0]  (%p1418_p5), %s1631_s10, 16, %s1629_s18, %s994_s22  }
 0x3d8 PF: > { %p1186_p1 = scmp.ge.s32.totalorder %s1317_s14, 2  ;;  %s1018_s17 = sand.u32 1, %s1305_s11  }
 0x3d9   : > { %s1019_s23 = scalar_lea.sflag [#allocation4], %s1018_s17 }
 0x3da   : > { %p1183_p2 = pnand %p1186_p1, %p1422_p6 }
 0x3dc   : > { %1300 = dma.done.wait (!%p1183_p2), %s1019_s23, 16  }
 0x3dd   : > { %1302 = vsyncadd (!%p1183_p2), %s1019_s23, 4294967280  ;;  %p21_p3 = scmp.ge.s32.totalorder %s1405_s16, 4   ;;  %s1683_s11 = smov %s1309_s12 }
 0x3de   : > { %s1684_s12 = smov %s1313_s13  ;;  %s1685_s13 = smov %s1416_s19 }
 0x3df   : > { %s1686_s14 = smov %s1405_s16  ;;  %23 = sbr.rel (!%p21_p3) target bundleno = 6 (0x6), region = 91 }
 0x3e6   :  { %1023 = vsyncpa [#allocation4], 1 }
 0x3e7   :  { %1025 = vsyncpa [#allocation4 + $0x1], 1 }

</bundles_post_ra>
